<compile_context>
chip_gen: v6e
topology: v6e:2x2x1
jax: 0.10.0
libtpu: 0.0.40
codegen_flags: <defaults>
</compile_context>

<pallas_src>
import jax
import jax.numpy as jnp
from jax.experimental import pallas as pl
from jax.experimental.pallas import tpu as pltpu

LEAKINESS = 0.01
BN_EPS = 1e-5
S_PAD = 128   # fc1 input lanes padded to one full vreg lane width
H1 = 400
H2 = 300


def _leaky_relu(x, slope):
    return jnp.where(x > 0, x, slope * x)


def critic_kernel(state_ref, action_ref, w1_ref, w2s_ref, p_ref,
                  out_ref, xpad_ref):
    S = state_ref.shape[1]
    A = action_ref.shape[1]
    h2 = w2s_ref.shape[1]

    # Unpack the single small-parameter slab (one DMA instead of seven).
    p = p_ref[...]                          # (5 + A, H1) f32
    b1 = p[0:1, :]
    gamma = p[1:2, :]
    beta = p[2:3, :]
    b2 = p[3:4, :h2]
    w3 = p[4:5, :h2]
    b3 = p[4:5, h2:h2 + 1]                  # (1, 1)
    w2a = p[5:5 + A, :h2]                   # (A, h2)

    # Zero-pad state to 128 input lanes in a VMEM scratch (no wrapper pad op).
    xpad_ref[...] = jnp.zeros_like(xpad_ref)
    xpad_ref[:, :S] = state_ref[...]
    state_bf16 = xpad_ref[...].astype(jnp.bfloat16)

    # fc1: bf16 MXU matmul, f32 accumulation; leaky_relu in f32 on the VPU.
    x = jnp.dot(state_bf16, w1_ref[...],
                preferred_element_type=jnp.float32) + b1
    x = _leaky_relu(x, LEAKINESS)

    # BatchNorm1d (training mode, biased batch stats); affine folded into the
    # per-column scale so only one (B,400) multiply-add remains.
    mean = jnp.mean(x, axis=0, keepdims=True)
    xc = x - mean
    var = jnp.mean(xc * xc, axis=0, keepdims=True)
    scale = gamma * jax.lax.rsqrt(var + BN_EPS)     # EUP rsqrt on a (1,H1) row
    x = xc * scale + beta

    # fc2: cat([x, action]) @ W2^T split into:
    #   state branch (400x300): bf16 MXU matmul, f32 accumulation
    #   action branch (K = A, tiny): unrolled rank-1 broadcast FMAs on the VPU
    h = jnp.dot(x.astype(jnp.bfloat16), w2s_ref[...],
                preferred_element_type=jnp.float32) + b2
    action = action_ref[...]                        # (B, A) f32
    for k in range(A):                              # static unroll, A is small
        h = h + action[:, k:k + 1] * w2a[k:k + 1, :]
    h = _leaky_relu(h, LEAKINESS)

    # fc3 (out_features = 1): VPU multiply + cross-lane (XLU) reduction instead
    # of a degenerate N=1 MXU matmul; direct (B, 1) store.
    out_ref[...] = jnp.sum(h * w3, axis=-1, keepdims=True) + b3


def critic_forward(state, action, params):
    B, _ = state.shape
    A = action.shape[1]
    s_pad, h1 = params["w1"].shape          # (128, 400)
    h2 = params["w2s"].shape[1]             # 300

    flops = 2 * B * (s_pad * h1 + h1 * h2 + A * h2 + h2)
    bytes_accessed = (
        state.size * 4 + action.size * 4
        + params["w1"].size * 2 + params["w2s"].size * 2      # bf16 weights
        + params["pslab"].size * 4
        + B * 4)                                              # (B,1) output

    vmem = pl.BlockSpec(memory_space=pltpu.MemorySpace.VMEM)
    return pl.pallas_call(
        critic_kernel,
        out_shape=jax.ShapeDtypeStruct((B, 1), jnp.float32),
        in_specs=[vmem] * 5,
        out_specs=vmem,
        scratch_shapes=[pltpu.VMEM((B, s_pad), jnp.float32)],
        cost_estimate=pl.CostEstimate(
            flops=flops, transcendentals=h1, bytes_accessed=bytes_accessed),
    )(state, action, params["w1"], params["w2s"], params["pslab"])


def init_params(key, state_size, action_size, h1=H1, h2=H2, s_pad=S_PAD):
    ks = jax.random.split(key, 6)
    # hidden_init uses weight.size(0) = out_features (matches the PyTorch code).
    lim1 = 1.0 / jnp.sqrt(jnp.float32(h1))
    lim2 = 1.0 / jnp.sqrt(jnp.float32(h2))
    lim3 = 0.003

    # fc1: PyTorch weight is (400, S); store transposed (S, 400), zero-pad rows
    # to 128 lanes, cast the (large) weight to bf16 for halved DMA.
    w1 = jax.random.uniform(ks[0], (state_size, h1), jnp.float32, -lim1, lim1)
    w1 = jnp.zeros((s_pad, h1), jnp.float32).at[:state_size].set(w1)
    w1 = w1.astype(jnp.bfloat16)
    lb1 = 1.0 / jnp.sqrt(jnp.float32(state_size))
    b1 = jax.random.uniform(ks[1], (h1,), jnp.float32, -lb1, lb1)

    # BatchNorm1d affine params (defaults: gamma=1, beta=0).
    gamma = jnp.ones((h1,), jnp.float32)
    beta = jnp.zeros((h1,), jnp.float32)

    # fc2: PyTorch weight is (300, 400 + A); store transposed and split.
    w2 = jax.random.uniform(ks[2], (h1 + action_size, h2), jnp.float32,
                            -lim2, lim2)
    w2s = w2[:h1, :].astype(jnp.bfloat16)    # big block -> bf16 (MXU)
    w2a = w2[h1:, :]                         # tiny block -> f32 (VPU FMA)
    lb2 = 1.0 / jnp.sqrt(jnp.float32(h1 + action_size))
    b2 = jax.random.uniform(ks[3], (h2,), jnp.float32, -lb2, lb2)

    # fc3: stored as a row for the VPU multiply + lane reduction.
    w3 = jax.random.uniform(ks[4], (h2,), jnp.float32, -lim3, lim3)
    lb3 = 1.0 / jnp.sqrt(jnp.float32(h2))
    b3 = jax.random.uniform(ks[5], (), jnp.float32, -lb3, lb3)

    # Pack all small f32 parameters into one contiguous slab (single DMA).
    pslab = jnp.zeros((5 + action_size, h1), jnp.float32)
    pslab = pslab.at[0, :].set(b1)
    pslab = pslab.at[1, :].set(gamma)
    pslab = pslab.at[2, :].set(beta)
    pslab = pslab.at[3, :h2].set(b2)
    pslab = pslab.at[4, :h2].set(w3)
    pslab = pslab.at[4, h2].set(b3)
    pslab = pslab.at[5:5 + action_size, :h2].set(w2a)

    return {"w1": w1, "w2s": w2s, "pslab": pslab}


if __name__ == "__main__":
    key = jax.random.PRNGKey(0)
    k_state, k_action, k_params = jax.random.split(key, 3)

    batch = 8
    state_size = 33
    action_size = 4

    state = jax.random.normal(k_state, (batch, state_size), jnp.float32)
    action = jax.random.normal(k_action, (batch, action_size), jnp.float32)
    params = init_params(k_params, state_size, action_size)

    q = critic_forward(state, action, params)
    jax.block_until_ready(q)

    assert q.shape == (batch, 1) and q.dtype == jnp.float32
    print("KERNEL_OK")
</pallas_src>

<mosaic_0001>
module attributes {stable_mosaic.version = 11 : i64} {
  func.func @critic_kernel(%arg0: memref<8x33xf32, #tpu.memory_space<vmem>>, %arg1: memref<8x4xf32, #tpu.memory_space<vmem>>, %arg2: memref<128x400xbf16, #tpu.memory_space<vmem>>, %arg3: memref<400x300xbf16, #tpu.memory_space<vmem>>, %arg4: memref<9x400xf32, #tpu.memory_space<vmem>>, %arg5: memref<8x1xf32, #tpu.memory_space<vmem>>, %arg6: memref<8x128xf32, #tpu.memory_space<vmem>>) attributes {dimension_semantics = [], scalar_prefetch = 0 : i64, scratch_operands = 1 : i64, tpu.core_type = #tpu.core_type<tc>} {
    %c0 = arith.constant 0 : index
    %c0_0 = arith.constant 0 : index
    %0 = vector.load %arg4[%c0, %c0_0] : memref<9x400xf32, #tpu.memory_space<vmem>>, vector<9x400xf32>
    %1 = vector.extract_strided_slice %0 {offsets = [0, 0], sizes = [1, 400], strides = [1, 1]} : vector<9x400xf32> to vector<1x400xf32>
    %2 = vector.extract_strided_slice %0 {offsets = [1, 0], sizes = [1, 400], strides = [1, 1]} : vector<9x400xf32> to vector<1x400xf32>
    %3 = vector.extract_strided_slice %0 {offsets = [2, 0], sizes = [1, 400], strides = [1, 1]} : vector<9x400xf32> to vector<1x400xf32>
    %4 = vector.extract_strided_slice %0 {offsets = [3, 0], sizes = [1, 300], strides = [1, 1]} : vector<9x400xf32> to vector<1x300xf32>
    %5 = vector.extract_strided_slice %0 {offsets = [4, 0], sizes = [1, 300], strides = [1, 1]} : vector<9x400xf32> to vector<1x300xf32>
    %6 = vector.extract_strided_slice %0 {offsets = [4, 300], sizes = [1, 1], strides = [1, 1]} : vector<9x400xf32> to vector<1x1xf32>
    %7 = vector.extract_strided_slice %0 {offsets = [5, 0], sizes = [4, 300], strides = [1, 1]} : vector<9x400xf32> to vector<4x300xf32>
    %cst = arith.constant 0.000000e+00 : f32
    %8 = vector.broadcast %cst : f32 to vector<8x128xf32>
    %c0_1 = arith.constant 0 : index
    %c0_2 = arith.constant 0 : index
    %9 = vector.load %arg6[%c0_1, %c0_2] : memref<8x128xf32, #tpu.memory_space<vmem>>, vector<8x128xf32>
    tpu.vector_store %arg6[%c0_1, %c0_2], %8 {strides = array<i32>} : memref<8x128xf32, #tpu.memory_space<vmem>>, vector<8x128xf32>,
    %c0_3 = arith.constant 0 : index
    %c0_4 = arith.constant 0 : index
    %10 = vector.load %arg0[%c0_3, %c0_4] : memref<8x33xf32, #tpu.memory_space<vmem>>, vector<8x33xf32>
    %c0_5 = arith.constant 0 : index
    %c0_6 = arith.constant 0 : index
    %11 = vector.load %arg6[%c0_5, %c0_6] : memref<8x128xf32, #tpu.memory_space<vmem>>, vector<8x33xf32>
    tpu.vector_store %arg6[%c0_5, %c0_6], %10 {strides = array<i32>} : memref<8x128xf32, #tpu.memory_space<vmem>>, vector<8x33xf32>,
    %c0_7 = arith.constant 0 : index
    %c0_8 = arith.constant 0 : index
    %12 = vector.load %arg6[%c0_7, %c0_8] : memref<8x128xf32, #tpu.memory_space<vmem>>, vector<8x128xf32>
    %13 = arith.truncf %12 : vector<8x128xf32> to vector<8x128xbf16>
    %c0_9 = arith.constant 0 : index
    %c0_10 = arith.constant 0 : index
    %14 = vector.load %arg2[%c0_9, %c0_10] : memref<128x400xbf16, #tpu.memory_space<vmem>>, vector<128x400xbf16>
    %cst_11 = arith.constant dense<0.000000e+00> : vector<8x400xf32>
    %15 = tpu.matmul %13, %14, %cst_11 {dimension_numbers = #tpu.dot_dimension_numbers<[1], [0], [0], [1], [0, 0, 1, 1], [], []>} : vector<8x128xbf16>, vector<128x400xbf16>, vector<8x400xf32> -> vector<8x400xf32>
    %16 = vector.broadcast %1 : vector<1x400xf32> to vector<8x400xf32>
    %17 = arith.addf %15, %16 : vector<8x400xf32>
    %cst_12 = arith.constant 0.000000e+00 : f32
    %18 = vector.broadcast %cst_12 : f32 to vector<8x400xf32>
    %19 = arith.cmpf ogt, %17, %18 : vector<8x400xf32>
    %cst_13 = arith.constant 0.00999999977 : f32
    %20 = vector.broadcast %cst_13 : f32 to vector<8x400xf32>
    %21 = arith.mulf %20, %17 : vector<8x400xf32>
    %22 = arith.select %19, %17, %21 : vector<8x400xi1>, vector<8x400xf32>
    %cst_14 = arith.constant dense<0.000000e+00> : vector<400xf32>
    %23 = vector.multi_reduction <add>, %22, %cst_14 [0] : vector<8x400xf32> to vector<400xf32>
    %24 = vector.shape_cast %23 : vector<400xf32> to vector<1x400xf32>
    %cst_15 = arith.constant 8.000000e+00 : f32
    %25 = vector.broadcast %cst_15 : f32 to vector<1x400xf32>
    %26 = arith.divf %24, %25 : vector<1x400xf32>
    %27 = vector.broadcast %26 : vector<1x400xf32> to vector<8x400xf32>
    %28 = arith.subf %22, %27 : vector<8x400xf32>
    %29 = arith.mulf %28, %28 : vector<8x400xf32>
    %cst_16 = arith.constant dense<0.000000e+00> : vector<400xf32>
    %30 = vector.multi_reduction <add>, %29, %cst_16 [0] : vector<8x400xf32> to vector<400xf32>
    %31 = vector.shape_cast %30 : vector<400xf32> to vector<1x400xf32>
    %cst_17 = arith.constant 8.000000e+00 : f32
    %32 = vector.broadcast %cst_17 : f32 to vector<1x400xf32>
    %33 = arith.divf %31, %32 : vector<1x400xf32>
    %cst_18 = arith.constant 9.99999974E-6 : f32
    %34 = vector.broadcast %cst_18 : f32 to vector<1x400xf32>
    %35 = arith.addf %33, %34 : vector<1x400xf32>
    %36 = math.rsqrt %35 : vector<1x400xf32>
    %37 = arith.mulf %2, %36 : vector<1x400xf32>
    %38 = vector.broadcast %37 : vector<1x400xf32> to vector<8x400xf32>
    %39 = arith.mulf %28, %38 : vector<8x400xf32>
    %40 = vector.broadcast %3 : vector<1x400xf32> to vector<8x400xf32>
    %41 = arith.addf %39, %40 : vector<8x400xf32>
    %42 = arith.truncf %41 : vector<8x400xf32> to vector<8x400xbf16>
    %c0_19 = arith.constant 0 : index
    %c0_20 = arith.constant 0 : index
    %43 = vector.load %arg3[%c0_19, %c0_20] : memref<400x300xbf16, #tpu.memory_space<vmem>>, vector<400x300xbf16>
    %cst_21 = arith.constant dense<0.000000e+00> : vector<8x300xf32>
    %44 = tpu.matmul %42, %43, %cst_21 {dimension_numbers = #tpu.dot_dimension_numbers<[1], [0], [0], [1], [0, 0, 1, 1], [], []>} : vector<8x400xbf16>, vector<400x300xbf16>, vector<8x300xf32> -> vector<8x300xf32>
    %45 = vector.broadcast %4 : vector<1x300xf32> to vector<8x300xf32>
    %46 = arith.addf %44, %45 : vector<8x300xf32>
    %c0_22 = arith.constant 0 : index
    %c0_23 = arith.constant 0 : index
    %47 = vector.load %arg1[%c0_22, %c0_23] : memref<8x4xf32, #tpu.memory_space<vmem>>, vector<8x4xf32>
    %48 = vector.extract_strided_slice %47 {offsets = [0, 0], sizes = [8, 1], strides = [1, 1]} : vector<8x4xf32> to vector<8x1xf32>
    %49 = vector.extract_strided_slice %7 {offsets = [0, 0], sizes = [1, 300], strides = [1, 1]} : vector<4x300xf32> to vector<1x300xf32>
    %50 = vector.broadcast %48 : vector<8x1xf32> to vector<8x300xf32>
    %51 = vector.broadcast %49 : vector<1x300xf32> to vector<8x300xf32>
    %52 = arith.mulf %50, %51 : vector<8x300xf32>
    %53 = arith.addf %46, %52 : vector<8x300xf32>
    %54 = vector.extract_strided_slice %47 {offsets = [0, 1], sizes = [8, 1], strides = [1, 1]} : vector<8x4xf32> to vector<8x1xf32>
    %55 = vector.extract_strided_slice %7 {offsets = [1, 0], sizes = [1, 300], strides = [1, 1]} : vector<4x300xf32> to vector<1x300xf32>
    %56 = vector.broadcast %54 : vector<8x1xf32> to vector<8x300xf32>
    %57 = vector.broadcast %55 : vector<1x300xf32> to vector<8x300xf32>
    %58 = arith.mulf %56, %57 : vector<8x300xf32>
    %59 = arith.addf %53, %58 : vector<8x300xf32>
    %60 = vector.extract_strided_slice %47 {offsets = [0, 2], sizes = [8, 1], strides = [1, 1]} : vector<8x4xf32> to vector<8x1xf32>
    %61 = vector.extract_strided_slice %7 {offsets = [2, 0], sizes = [1, 300], strides = [1, 1]} : vector<4x300xf32> to vector<1x300xf32>
    %62 = vector.broadcast %60 : vector<8x1xf32> to vector<8x300xf32>
    %63 = vector.broadcast %61 : vector<1x300xf32> to vector<8x300xf32>
    %64 = arith.mulf %62, %63 : vector<8x300xf32>
    %65 = arith.addf %59, %64 : vector<8x300xf32>
    %66 = vector.extract_strided_slice %47 {offsets = [0, 3], sizes = [8, 1], strides = [1, 1]} : vector<8x4xf32> to vector<8x1xf32>
    %67 = vector.extract_strided_slice %7 {offsets = [3, 0], sizes = [1, 300], strides = [1, 1]} : vector<4x300xf32> to vector<1x300xf32>
    %68 = vector.broadcast %66 : vector<8x1xf32> to vector<8x300xf32>
    %69 = vector.broadcast %67 : vector<1x300xf32> to vector<8x300xf32>
    %70 = arith.mulf %68, %69 : vector<8x300xf32>
    %71 = arith.addf %65, %70 : vector<8x300xf32>
    %cst_24 = arith.constant 0.000000e+00 : f32
    %72 = vector.broadcast %cst_24 : f32 to vector<8x300xf32>
    %73 = arith.cmpf ogt, %71, %72 : vector<8x300xf32>
    %cst_25 = arith.constant 0.00999999977 : f32
    %74 = vector.broadcast %cst_25 : f32 to vector<8x300xf32>
    %75 = arith.mulf %74, %71 : vector<8x300xf32>
    %76 = arith.select %73, %71, %75 : vector<8x300xi1>, vector<8x300xf32>
    %77 = vector.broadcast %5 : vector<1x300xf32> to vector<8x300xf32>
    %78 = arith.mulf %76, %77 : vector<8x300xf32>
    %cst_26 = arith.constant dense<0.000000e+00> : vector<8xf32>
    %79 = vector.multi_reduction <add>, %78, %cst_26 [1] : vector<8x300xf32> to vector<8xf32>
    %80 = vector.shape_cast %79 : vector<8xf32> to vector<8x1xf32>
    %81 = vector.broadcast %6 : vector<1x1xf32> to vector<8x1xf32>
    %82 = arith.addf %80, %81 : vector<8x1xf32>
    %c0_27 = arith.constant 0 : index
    %c0_28 = arith.constant 0 : index
    %83 = vector.load %arg5[%c0_27, %c0_28] : memref<8x1xf32, #tpu.memory_space<vmem>>, vector<8x1xf32>
    tpu.vector_store %arg5[%c0_27, %c0_28], %82 {strides = array<i32>} : memref<8x1xf32, #tpu.memory_space<vmem>>, vector<8x1xf32>,
    return
  }
}

</mosaic_0001>

<bundles_post_ra>
// kernel: tpu_custom_call.1
= control target key start
LH: loop header
LB: loop body
LE: loop exit
PB: predicated region body
PF: predicated region fallthrough
CT: control target
= control target key end

     0   :  { %10 = vsyncpa [#allocation4], 0  ;;  %s1609_s18 = smov [#allocation3]   ;;  %s1847_s0 = inlined_call_operand.vmem [shape: f32[8,33], index: 0, kind: input, shape index: {}]   ;;  %s1848_s1 = inlined_call_operand.vmem [shape: f32[8,4], index: 1, kind: input, shape index: {}]   ;;  %s1849_s2 = inlined_call_operand.vmem [shape: bf16[128,400], index: 2, kind: input, shape index: {}]   ;;  %s1850_s3 = inlined_call_operand.hbm [shape: bf16[400,300], index: 3, kind: input, shape index: {}]   ;;  %s1851_s4 = inlined_call_operand.vmem [shape: f32[9,400], index: 4, kind: input, shape index: {}]   ;;  %s1852_s5 = inlined_call_operand.vmem [shape: f32[8,1], index: 5, kind: output, shape index: {}]  }
   0x1   :  { %s22_s19 = sshll.u32 %s1609_s18, 4  ;;  %s23_s19 = int_to_ptr.vmem [resolvable:$true] %s22_s19 }
   0x2   :  { %s1595_s20 = scalar_lea.vmem %s23_s19, 9600  ;;  %p1600_p1 = scmp.lt.s32.totalorder %s23_s19, %s23_s19 }
   0x3   :  { %p1596_p0 = scmp.ne.s32.totalorder %s23_s19, %s1595_s20  ;;  %p1601_p2 = scmp.lt.s32.totalorder %s1595_s20, %s1595_s20 }
   0x5   :  { %p1602_p3 = por %p1601_p2, %p1600_p1 }
   0x7   :  { %p1603_p4 = pnand %p1602_p3, %p1596_p0 }
   0x9   :  { %1606 = shalt.err (!%p1603_p4)
}
   0xa   :  { %s1610_s21 = smov 192   ;;  %s1611_s22 = smov 12  }
   0xb   :  { %28 = dma.hbm_to_vmem [thread:$0]  %s1850_s3, 9600, %s23_s19, [#allocation4], %s1610_s21, %s1610_s21, %s1611_s22  }
   0xc   :  { %1607 = dma.done.wait [#allocation4], 9600  }
   0xd   :  { %1608 = vsyncadd [#allocation4], 4294957696  ;;  %v1612_v0 = vmov 0   ;;  %v1613_v1 = vmov 0.0   ;;  %v1431_v2 = vld [vmem:[%s1849_s2 + $0xe4] ss:$16 sps:$4 sm:$0xff]  }
   0xe   :  { %288 = vmatprep.mubr.bf16.mxu0 %v1612_v0  ;;  %329 = vmatprep.mubr.bf16.mxu1 %v1612_v0  ;;  %42 = vst [vmem:[#allocation2] sm:$0xff] %v1613_v1  ;;  %v1433_v3 = vld [vmem:[%s1849_s2 + $0xec] ss:$16 sps:$4 sm:$0xff]   ;;  %v1435_v4 = vld [vmem:[%s1849_s2 + $0xe0] ss:$16 sps:$4 sm:$0xff]   ;;  %vm44_vm0 = vcmask 269312  }
   0xf   :  { %1426 = vset.pattern.permute.xlu0 %v1612_v0  ;;  %256 = vmatprep.subr.bf16.mxu0 %v1431_v2  ;;  %v1436_v5 = vld [vmem:[%s1849_s2 + $0xe8] ss:$16 sps:$4 sm:$0xff]   ;;  %v1437_v6 = vld [vmem:[%s1849_s2 + $0xc4] ss:$16 sps:$4 sm:$0xff]   ;;  %v1439_v7 = vld [vmem:[%s1849_s2 + $0xcc] ss:$16 sps:$4 sm:$0xff]  }
  0x10   :  { %297 = vmatprep.subr.bf16.mxu1 %v1433_v3  ;;  %257 = vmatpush1.bf16.msra.mxu0 %v1435_v4  ;;  %v1441_v8 = vld [vmem:[%s1849_s2 + $0xc0] ss:$16 sps:$4 sm:$0xff]   ;;  %v1442_v9 = vld [vmem:[%s1849_s2 + $0xc8] ss:$16 sps:$4 sm:$0xff]   ;;  %v1443_v10 = vld [vmem:[%s1849_s2 + $0xa4] ss:$16 sps:$4 sm:$0xff]  }
  0x11   :  { %298 = vmatpush1.bf16.msra.mxu1 %v1436_v5  ;;  %258 = vmatprep.subr.bf16.mxu0 %v1437_v6  ;;  %v1445_v11 = vld [vmem:[%s1849_s2 + $0xac] ss:$16 sps:$4 sm:$0xff]   ;;  %v1447_v12 = vld [vmem:[%s1849_s2 + $0xa0] ss:$16 sps:$4 sm:$0xff]   ;;  %v1448_v13 = vld [vmem:[%s1849_s2 + $0xa8] ss:$16 sps:$4 sm:$0xff]  }
  0x12   :  { %299 = vmatprep.subr.bf16.mxu1 %v1439_v7  ;;  %v1449_v14 = vld [vmem:[%s1849_s2 + $0x84] ss:$16 sps:$4 sm:$0xff]   ;;  %v1451_v15 = vld [vmem:[%s1849_s2 + $0x8c] ss:$16 sps:$4 sm:$0xff]   ;;  %v1453_v16 = vld [vmem:[%s1849_s2 + $0x80] ss:$16 sps:$4 sm:$0xff]  }
  0x13   :  { %v1454_v17 = vld [vmem:[%s1849_s2 + $0x88] ss:$16 sps:$4 sm:$0xff]   ;;  %v1455_v18 = vld [vmem:[%s1849_s2 + $0x64] ss:$16 sps:$4 sm:$0xff]   ;;  %v1457_v19 = vld [vmem:[%s1849_s2 + $0x6c] ss:$16 sps:$4 sm:$0xff]  }
  0x14   :  { %259 = vmatpush1.bf16.msra.mxu0 %v1441_v8  ;;  %v1459_v20 = vld [vmem:[%s1849_s2 + $0x60] ss:$16 sps:$4 sm:$0xff]   ;;  %v1460_v21 = vld [vmem:[%s1849_s2 + $0x68] ss:$16 sps:$4 sm:$0xff]   ;;  %v1461_v22 = vld [vmem:[%s1849_s2 + $0x44] ss:$16 sps:$4 sm:$0xff]  }
  0x15   :  { %300 = vmatpush1.bf16.msra.mxu1 %v1442_v9  ;;  %260 = vmatprep.subr.bf16.mxu0 %v1443_v10  ;;  %v1463_v23 = vld [vmem:[%s1849_s2 + $0x4c] ss:$16 sps:$4 sm:$0xff]   ;;  %v1465_v24 = vld [vmem:[%s1849_s2 + $0x40] ss:$16 sps:$4 sm:$0xff]   ;;  %v1466_v25 = vld [vmem:[%s1849_s2 + $0x48] ss:$16 sps:$4 sm:$0xff]  }
  0x16   :  { %301 = vmatprep.subr.bf16.mxu1 %v1445_v11  ;;  %v1467_v26 = vld [vmem:[%s1849_s2 + $0x24] ss:$16 sps:$4 sm:$0xff]   ;;  %v1469_v27 = vld [vmem:[%s1849_s2 + $0x2c] ss:$16 sps:$4 sm:$0xff]   ;;  %v1471_v29 = vld [vmem:[%s1849_s2 + $0x20] ss:$16 sps:$4 sm:$0xff]  }
  0x17   :  { %v43_v28 = vld [vmem:[%s1847_s0] sm:$0xff]  ;;  %v1472_v30 = vld [vmem:[%s1849_s2 + $0x28] ss:$16 sps:$4 sm:$0xff]   ;;  %v1475_v32 = vld [vmem:[%s1849_s2 + $0xc] ss:$16 sps:$4 sm:$0xff]   ;;  %vm368_vm5 = vcmask 130048  }
  0x18   :  { %261 = vmatpush1.bf16.msra.mxu0 %v1447_v12  ;;  %45 = vst.msk [vmem:[#allocation2] sm:$0xff] %vm44_vm0, %v43_v28  ;;  %v1473_v31 = vld [vmem:[%s1849_s2 + $0x4] ss:$16 sps:$4 sm:$0xff]   ;;  %v1477_v33 = vld [vmem:[%s1849_s2] ss:$16 sps:$4 sm:$0xff]   ;;  %v1616_v28 = vmov 3  }
  0x19   :  { %302 = vmatpush1.bf16.msra.mxu1 %v1448_v13  ;;  %262 = vmatprep.subr.bf16.mxu0 %v1449_v14  ;;  %v1478_v34 = vld [vmem:[%s1849_s2 + $0x8] ss:$16 sps:$4 sm:$0xff]   ;;  %v1481_v37 = vld [vmem:[#allocation3 + $0xac] ss:$12 sps:$4 sm:$0xff]   ;;  %v1479_v38 = vld [vmem:[#allocation3 + $0xa8] ss:$12 sps:$4 sm:$0xff]  }
  0x1a   :  { %303 = vmatprep.subr.bf16.mxu1 %v1451_v15  ;;  %v1484_v39 = vld [vmem:[#allocation3 + $0x94] ss:$12 sps:$4 sm:$0xff]   ;;  %v1482_v40 = vld [vmem:[#allocation3 + $0x90] ss:$12 sps:$4 sm:$0xff]   ;;  %v1485_v42 = vld [vmem:[#allocation3 + $0x78] ss:$12 sps:$4 sm:$0xff]  }
  0x1b   :  { %v1487_v41 = vld [vmem:[#allocation3 + $0x7c] ss:$12 sps:$4 sm:$0xff]   ;;  %v1490_v43 = vld [vmem:[#allocation3 + $0x64] ss:$12 sps:$4 sm:$0xff]   ;;  %v1488_v44 = vld [vmem:[#allocation3 + $0x60] ss:$12 sps:$4 sm:$0xff]  }
  0x1c   :  { %263 = vmatpush1.bf16.msra.mxu0 %v1453_v16  ;;  %v1493_v45 = vld [vmem:[#allocation3 + $0x4c] ss:$12 sps:$4 sm:$0xff]   ;;  %v1491_v46 = vld [vmem:[#allocation3 + $0x48] ss:$12 sps:$4 sm:$0xff]   ;;  %v1494_v48 = vld [vmem:[#allocation3 + $0x30] ss:$12 sps:$4 sm:$0xff]  }
  0x1d   :  { %304 = vmatpush1.bf16.msra.mxu1 %v1454_v17  ;;  %264 = vmatprep.subr.bf16.mxu0 %v1455_v18  ;;  %v1496_v47 = vld [vmem:[#allocation3 + $0x34] ss:$12 sps:$4 sm:$0xff]   ;;  %v1499_v49 = vld [vmem:[#allocation3 + $0x1c] ss:$12 sps:$4 sm:$0xff]   ;;  %v1497_v50 = vld [vmem:[#allocation3 + $0x18] ss:$12 sps:$4 sm:$0xff]  }
  0x1e   :  { %305 = vmatprep.subr.bf16.mxu1 %v1457_v19  ;;  %v1502_v51 = vld [vmem:[#allocation3 + $0x4] ss:$12 sps:$4 sm:$0xff]   ;;  %v1500_v52 = vld [vmem:[#allocation3] ss:$12 sps:$4 sm:$0xff]   ;;  %v1503_v54 = vld [vmem:[#allocation3 + $0x228] ss:$12 sps:$4 sm:$0xff]  }
  0x1f   :  { %v46_v35 = vld [vmem:[#allocation2] sm:$0xff]  ;;  %v1506_v56 = vld [vmem:[#allocation3 + $0x168] ss:$12 sps:$4 sm:$0xff]   ;;  %v1523_v2 = vld [vmem:[#allocation3 + $0x1e4] ss:$12 sps:$4 sm:$0xff]   ;;  %vm1266_vm9 = vcmask 359424  }
  0x20   :  { %265 = vmatpush1.bf16.msra.mxu0 %v1459_v20  ;;  %v47_v36 = vpack.c.bf16 %v46_v35, %v46_v35  ;;  %v1505_v53 = vld [vmem:[#allocation3 + $0x22c] ss:$12 sps:$4 sm:$0xff]   ;;  %v1511_v57 = vld [vmem:[#allocation3 + $0x214] ss:$12 sps:$4 sm:$0xff]   ;;  %v1509_v58 = vld [vmem:[#allocation3 + $0x210] ss:$12 sps:$4 sm:$0xff]  }
  0x21   :  { %306 = vmatpush1.bf16.msra.mxu1 %v1460_v21  ;;  %266 = vmatprep.subr.bf16.mxu0 %v1461_v22  ;;  %v1508_v55 = vld [vmem:[#allocation3 + $0x16c] ss:$12 sps:$4 sm:$0xff]   ;;  %v1514_v59 = vld [vmem:[#allocation3 + $0x154] ss:$12 sps:$4 sm:$0xff]   ;;  %v1512_v60 = vld [vmem:[#allocation3 + $0x150] ss:$12 sps:$4 sm:$0xff]  }
  0x22   :  { %307 = vmatprep.subr.bf16.mxu1 %v1463_v23  ;;  %v1517_v61 = vld [vmem:[#allocation3 + $0x1fc] ss:$12 sps:$4 sm:$0xff]   ;;  %v1515_v62 = vld [vmem:[#allocation3 + $0x1f8] ss:$12 sps:$4 sm:$0xff]   ;;  %v1521_v3 = vld [vmem:[#allocation3 + $0x1e0] ss:$12 sps:$4 sm:$0xff]  }
  0x23   :  { %v1520_v63 = vld [vmem:[#allocation3 + $0x13c] ss:$12 sps:$4 sm:$0xff]   ;;  %v1518_v1 = vld [vmem:[#allocation3 + $0x138] ss:$12 sps:$4 sm:$0xff]   ;;  %v1524_v5 = vld [vmem:[#allocation3 + $0x120] ss:$12 sps:$4 sm:$0xff]  }
  0x24   :  { %267 = vmatpush1.bf16.msra.mxu0 %v1465_v24  ;;  %v1526_v4 = vld [vmem:[#allocation3 + $0x124] ss:$12 sps:$4 sm:$0xff]   ;;  %v1529_v6 = vld [vmem:[#allocation3 + $0x1cc] ss:$12 sps:$4 sm:$0xff]   ;;  %v1527_v7 = vld [vmem:[#allocation3 + $0x1c8] ss:$12 sps:$4 sm:$0xff]  }
  0x25   :  { %308 = vmatpush1.bf16.msra.mxu1 %v1466_v25  ;;  %268 = vmatprep.subr.bf16.mxu0 %v1467_v26  ;;  %v1532_v8 = vld [vmem:[#allocation3 + $0x10c] ss:$12 sps:$4 sm:$0xff]   ;;  %v1530_v9 = vld [vmem:[#allocation3 + $0x108] ss:$12 sps:$4 sm:$0xff]   ;;  %v1533_v11 = vld [vmem:[#allocation3 + $0x1b0] ss:$12 sps:$4 sm:$0xff]  }
  0x26   :  { %309 = vmatprep.subr.bf16.mxu1 %v1469_v27  ;;  %v1535_v10 = vld [vmem:[#allocation3 + $0x1b4] ss:$12 sps:$4 sm:$0xff]   ;;  %v1536_v13 = vld [vmem:[#allocation3 + $0xf0] ss:$12 sps:$4 sm:$0xff]   ;;  %v1539_v15 = vld [vmem:[#allocation3 + $0x198] ss:$12 sps:$4 sm:$0xff]  }
  0x27   :  { %v1538_v12 = vld [vmem:[#allocation3 + $0xf4] ss:$12 sps:$4 sm:$0xff]   ;;  %v1541_v14 = vld [vmem:[#allocation3 + $0x19c] ss:$12 sps:$4 sm:$0xff]   ;;  %v1542_v17 = vld [vmem:[#allocation3 + $0xd8] ss:$12 sps:$4 sm:$0xff]  }
  0x28   :  { %269 = vmatpush1.bf16.msra.mxu0 %v1471_v29  ;;  %v1544_v16 = vld [vmem:[#allocation3 + $0xdc] ss:$12 sps:$4 sm:$0xff]   ;;  %v1545_v18 = vld [vmem:[#allocation3 + $0x180] ss:$12 sps:$4 sm:$0xff]   ;;  %v1547_v19 = vld [vmem:[#allocation3 + $0x184] ss:$12 sps:$4 sm:$0xff]   ;;  %v80_v29 = vlaneseq }
  0x29   :  { %310 = vmatpush1.bf16.msra.mxu1 %v1472_v30  ;;  %270 = vmatprep.subr.bf16.mxu0 %v1473_v31  ;;  %v1550_v20 = vld [vmem:[#allocation3 + $0xc4] ss:$12 sps:$4 sm:$0xff]   ;;  %v1548_v21 = vld [vmem:[#allocation3 + $0xc0] ss:$12 sps:$4 sm:$0xff]   ;;  %v1151_v25 = vld [vmem:[%s1848_s1] sm:$0xff]  ;;  %v1614_v26 = vmov 2  }
  0x2a   :  { %311 = vmatprep.subr.bf16.mxu1 %v1475_v32  ;;  %v1553_v22 = vld [vmem:[#allocation3 + $0x244] ss:$12 sps:$4 sm:$0xff]   ;;  %v1551_v23 = vld [vmem:[#allocation3 + $0x240] ss:$12 sps:$4 sm:$0xff]   ;;  %1154 = vperm.xlu0 %1426, %v1151_v25   ;;  %v1615_v27 = vmov 1   ;;  %v1757_v30 = vshrl.u32 %v80_v29, 7 }
  0x2b   :  { %v1555_v24 = vld [vmem:[#allocation3 + $0x170] ss:$12 sps:$4 sm:$0xff]   ;;  %1428 = vset.pattern.permute.xlu1 %v1614_v26  ;;  %vm1276_vm10 = vcmask 7168  }
  0x2c   :  { %271 = vmatpush1.bf16.msra.mxu0 %v1477_v33  ;;  %1198 = vperm.xlu1 %1428, %v1151_v25   ;;  %v82_v31 = vsub.s32 0, %v1757_v30  ;;  %v1763_v32 = vld [vmem:[%s1851_s4] sm:$0xff]  ;;  %v1768_v33 = vld [vmem:[%s1851_s4 + $0x10] sm:$0xff] }
  0x2d   :  { %312 = vmatpush1.bf16.msra.mxu1 %v1478_v34  ;;  %989 = vmatprep.subr.bf16.mxu0 %v1481_v37  ;;  %v1780_v37 = vld [vmem:[%s1851_s4 + $0x18] sm:$0xff] }
  0x2e   :  { %1030 = vmatprep.subr.bf16.mxu1 %v1505_v53  ;;  %1427 = vset.pattern.permute.xlu0 %v1615_v27  ;;  %v83_v34 = vrot.slane %v1763_v32, %v82_v31  ;;  %v91_v35 = vrot.slane %v1768_v33, %v82_v31 }
  0x2f   :  { %289 = vmatmul.mubr.bf16.vlgmr.msra.gmra.mxu0 %v47_v36  ;;  %1176 = vperm.xlu0 %1427, %v1151_v25  }
  0x30   :  { %330 = vmatmul.mubr.bf16.vlgmr.msra.gmra.mxu1 %v47_v36  ;;  %990 = vmatpush1.bf16.msra.mxu0 %v1479_v38  ;;  %v1775_v36 = vld [vmem:[%s1851_s4 + $0x8] sm:$0xff] }
  0x31   :  { %991 = vmatprep.subr.bf16.mxu0 %v1484_v39  ;;  %1031 = vmatpush1.bf16.msra.mxu1 %v1503_v54 }
  0x32   :  { %1032 = vmatprep.subr.bf16.mxu1 %v1511_v57  ;;  %1429 = vset.pattern.permute.xlu1 %v1616_v28 }
  0x33   :  { %1220 = vperm.xlu1 %1429, %v1151_v25   ;;  %1430 = vset.pattern.permute.xlu0 %v1616_v28 }
  0x34   :  { %992 = vmatpush1.bf16.msra.mxu0 %v1482_v40  ;;  %v87_v40 = vrot.slane %v1775_v36, %v82_v31 }
  0x35   :  { %993 = vmatprep.subr.bf16.mxu0 %v1487_v41  ;;  %1033 = vmatpush1.bf16.msra.mxu1 %v1509_v58  ;;  %v95_v41 = vrot.slane %v1780_v37, %v82_v31 }
  0x36   :  { %1034 = vmatprep.subr.bf16.mxu1 %v1517_v61 }
  0x38   :  { %994 = vmatpush1.bf16.msra.mxu0 %v1485_v42 }
  0x39   :  { %995 = vmatprep.subr.bf16.mxu0 %v1490_v43  ;;  %1035 = vmatpush1.bf16.msra.mxu1 %v1515_v62 }
  0x3a   :  { %1036 = vmatprep.subr.bf16.mxu1 %v1523_v2 }
  0x3c   :  { %996 = vmatpush1.bf16.msra.mxu0 %v1488_v44 }
  0x3d   :  { %997 = vmatprep.subr.bf16.mxu0 %v1493_v45  ;;  %1037 = vmatpush1.bf16.msra.mxu1 %v1521_v3 }
  0x3e   :  { %1038 = vmatprep.subr.bf16.mxu1 %v1529_v6 }
  0x40   :  { %998 = vmatpush1.bf16.msra.mxu0 %v1491_v46 }
  0x41   :  { %999 = vmatprep.subr.bf16.mxu0 %v1496_v47  ;;  %1039 = vmatpush1.bf16.msra.mxu1 %v1527_v7 }
  0x42   :  { %1040 = vmatprep.subr.bf16.mxu1 %v1535_v10 }
  0x44   :  { %1000 = vmatpush1.bf16.msra.mxu0 %v1494_v48 }
  0x45   :  { %1001 = vmatprep.subr.bf16.mxu0 %v1499_v49  ;;  %1041 = vmatpush1.bf16.msra.mxu1 %v1533_v11 }
  0x46   :  { %1042 = vmatprep.subr.bf16.mxu1 %v1541_v14 }
  0x48   :  { %1002 = vmatpush1.bf16.msra.mxu0 %v1497_v50 }
  0x49   :  { %1003 = vmatprep.subr.bf16.mxu0 %v1502_v51  ;;  %1043 = vmatpush1.bf16.msra.mxu1 %v1539_v15 }
  0x4a   :  { %1044 = vmatprep.subr.bf16.mxu1 %v1547_v19 }
  0x4c   :  { %1004 = vmatpush1.bf16.msra.mxu0 %v1500_v52 }
  0x4d   :  { %1005 = vmatprep.subr.bf16.mxu0 %v1508_v55  ;;  %1045 = vmatpush1.bf16.msra.mxu1 %v1545_v18 }
  0x4e   :  { %1060 = vmatprep.subr.bf16.mxu1 %v1553_v22 }
  0x50   :  { %1006 = vmatpush2.bf16.msra.mxu0 %v1506_v56 }
  0x51   :  { %1007 = vmatprep.subr.bf16.mxu0 %v1514_v59  ;;  %1061 = vmatpush2.bf16.msra.mxu1 %v1551_v23 }
  0x52   :  { %1395 = vmatprep.subr.bf16.mxu1 %v1555_v24 }
  0x54   :  { %1008 = vmatpush2.bf16.msra.mxu0 %v1512_v60 }
  0x55   :  { %1009 = vmatprep.subr.bf16.mxu0 %v1520_v63 }
  0x58   :  { %1010 = vmatpush2.bf16.msra.mxu0 %v1518_v1 }
  0x59   :  { %1011 = vmatprep.subr.bf16.mxu0 %v1526_v4 }
  0x5c   :  { %1012 = vmatpush2.bf16.msra.mxu0 %v1524_v5 }
  0x5d   :  { %1013 = vmatprep.subr.bf16.mxu0 %v1532_v8 }
  0x60   :  { %1014 = vmatpush2.bf16.msra.mxu0 %v1530_v9 }
  0x61   :  { %1015 = vmatprep.subr.bf16.mxu0 %v1538_v12 }
  0x64   :  { %1016 = vmatpush2.bf16.msra.mxu0 %v1536_v13 }
  0x65   :  { %1017 = vmatprep.subr.bf16.mxu0 %v1544_v16 }
  0x68   :  { %1018 = vmatpush2.bf16.msra.mxu0 %v1542_v17 }
  0x69   :  { %1019 = vmatprep.subr.bf16.mxu0 %v1550_v20 }
  0x6c   :  { %1020 = vmatpush2.bf16.msra.mxu0 %v1548_v21 }
  0x6d   :  { %1111 = vmatprep.subr.bf16.mxu0 %v1612_v0 }
  0xef   :  { %v290_v38 = vpop.f32.mrf.mxu0 }
  0xf0   :  { %v331_v39 = vpop.f32.mrf.mxu1  ;;  %v291_v42 = vadd.f32 %v290_v38, %v83_v34 }
  0xf1   :  { %v332_v43 = vadd.f32 %v331_v39, %v91_v35  ;;  %v292_v44 = vpop.f32.mrf.mxu0 }
  0xf2   :  { %v333_v45 = vpop.f32.mrf.mxu1  ;;  %vm338_vm1 = vcmp.gt.f32.partialorder %v291_v42, 0.0  ;;  %v342_v46 = vmul.f32 0.01, %v291_v42  ;;  %v293_v48 = vadd.f32 %v292_v44, %v87_v40 }
  0xf3   :  { %vm340_vm2 = vcmp.gt.f32.partialorder %v332_v43, 0.0  ;;  %v344_v47 = vmul.f32 0.01, %v332_v43  ;;  %v334_v49 = vadd.f32 %v333_v45, %v95_v41  ;;  %v294_v50 = vpop.f32.mrf.mxu0 }
  0xf4   :  { %v335_v51 = vpop.f32.mrf.mxu1  ;;  %v346_v52 = vsel %vm338_vm1, %v291_v42, %v342_v46  ;;  %vm339_vm3 = vcmp.gt.f32.partialorder %v293_v48, 0.0  ;;  %v343_v56 = vmul.f32 0.01, %v293_v48 }
  0xf5   :  { %v348_v53 = vsel %vm340_vm2, %v332_v43, %v344_v47  ;;  %v350_v54 = vrot.slane %v346_v52, 4  ;;  %v295_v57 = vpop.f32.mrf.mxu0  ;;  %vm341_vm4 = vcmp.gt.f32.partialorder %v334_v49, 0.0  ;;  %v345_v59 = vmul.f32 0.01, %v334_v49 }
  0xf6   :  { %v362_v55 = vrot.slane %v348_v53, 4  ;;  %v336_v58 = vpop.f32.mrf.mxu1  ;;  %v347_v62 = vsel %vm339_vm3, %v293_v48, %v343_v56 }
  0xf7   :  { %v351_v60 = vadd.f32 %v350_v54, %v346_v52  ;;  %v356_v63 = vrot.slane %v347_v62, 4  ;;  %v349_v1 = vsel %vm341_vm4, %v334_v49, %v345_v59 }
  0xf8   :  { %v363_v61 = vadd.f32 %v362_v55, %v348_v53  ;;  %v369_v4 = vsel %vm368_vm5, %v349_v1, 0.0 }
  0xf9   :  { %v352_v2 = vrot.slane %v351_v60, 2  ;;  %v357_v5 = vadd.f32 %v356_v63, %v347_v62  ;;  %v370_v6 = vrot.slane %v369_v4, 4 }
  0xfa   :  { %v364_v3 = vrot.slane %v363_v61, 2 }
  0xfb   :  { %v353_v7 = vadd.f32 %v352_v2, %v351_v60  ;;  %v358_v9 = vrot.slane %v357_v5, 2  ;;  %v371_v10 = vadd.f32 %v370_v6, %v369_v4 }
  0xfc   :  { %v365_v8 = vadd.f32 %v364_v3, %v363_v61 }
  0xfd   :  { %v354_v11 = vrot.slane %v353_v7, 1  ;;  %v359_v13 = vadd.f32 %v358_v9, %v357_v5  ;;  %v372_v14 = vrot.slane %v371_v10, 2  ;;  %v432_v9 = vsub.s32 1, %v1757_v30 }
  0xfe   :  { %v366_v12 = vrot.slane %v365_v8, 1 }
  0xff   :  { %v355_v15 = vadd.f32 %v354_v11, %v353_v7  ;;  %v360_v17 = vrot.slane %v359_v13, 1  ;;  %v373_v18 = vadd.f32 %v372_v14, %v371_v10 }
 0x100   :  { %v367_v16 = vadd.f32 %v366_v12, %v365_v8 }
 0x101   :  { %v377_v19 = vmul.f32 0.125, %v355_v15  ;;  %v361_v21 = vadd.f32 %v360_v17, %v359_v13  ;;  %v374_v22 = vrot.slane %v373_v18, 1  ;;  %v452_v13 = vsub.s32 2, %v1757_v30 }
 0x102   :  { %v379_v20 = vmul.f32 0.125, %v367_v16 }
 0x103   :  { %v381_v23 = vsub.f32 %v346_v52, %v377_v19  ;;  %v378_v25 = vmul.f32 0.125, %v361_v21  ;;  %v375_v26 = vadd.f32 %v374_v22, %v373_v18 }
 0x104   :  { %v1785_v24 = vsub.f32 %v348_v53, %v379_v20  ;;  %v453_v20 = vrot.slane %v1763_v32, %v452_v13 }
 0x105   :  { %v385_v27 = vmul.f32 %v381_v23, %v381_v23  ;;  %v382_v29 = vsub.f32 %v347_v62, %v378_v25  ;;  %v380_v31 = vmul.f32 0.125, %v375_v26  ;;  %v457_v25 = vrot.slane %v1775_v36, %v452_v13 }
 0x106   :  { %v387_v28 = vmul.f32 %v1785_v24, %v1785_v24 }
 0x107   :  { %v389_v34 = vrot.slane %v385_v27, 4  ;;  %v386_v38 = vmul.f32 %v382_v29, %v382_v29  ;;  %v384_v39 = vsub.f32 %v349_v1, %v380_v31  ;;  %v461_v31 = vrot.slane %v1768_v33, %v452_v13 }
 0x108   :  { %v401_v35 = vrot.slane %v387_v28, 4 }
 0x109   :  { %v390_v40 = vadd.f32 %v389_v34, %v385_v27  ;;  %v395_v42 = vrot.slane %v386_v38, 4  ;;  %v388_v43 = vmul.f32 %v384_v39, %v384_v39  ;;  %v465_v34 = vrot.slane %v1780_v37, %v452_v13 }
 0x10a   :  { %v402_v41 = vadd.f32 %v401_v35, %v387_v28 }
 0x10b   :  { %v391_v44 = vrot.slane %v390_v40, 2  ;;  %v396_v46 = vadd.f32 %v395_v42, %v386_v38  ;;  %v407_v47 = vsel %vm368_vm5, %v388_v43, 0.0  ;;  %v1554_v42 = vld [vmem:[#allocation3 + $0x230] ss:$12 sps:$4 sm:$0xff]  }
 0x10c   :  { %v403_v45 = vrot.slane %v402_v41, 2  ;;  %v408_v50 = vrot.slane %v407_v47, 4 }
 0x10d   :  { %v392_v48 = vadd.f32 %v391_v44, %v390_v40  ;;  %v397_v51 = vrot.slane %v396_v46, 2 }
 0x10e   :  { %v404_v49 = vadd.f32 %v403_v45, %v402_v41  ;;  %v409_v54 = vadd.f32 %v408_v50, %v407_v47  ;;  %v1557_v47 = vld [vmem:[#allocation3 + $0x218] ss:$12 sps:$4 sm:$0xff]   ;;  %v1562_v50 = vld [vmem:[#allocation3 + $0x80] ss:$12 sps:$4 sm:$0xff]  }
 0x10f   :  { %v393_v52 = vrot.slane %v392_v48, 1  ;;  %v398_v55 = vadd.f32 %v397_v51, %v396_v46  ;;  %v1563_v51 = vld [vmem:[#allocation3 + $0x1e8] ss:$12 sps:$4 sm:$0xff]  }
 0x110   :  { %v405_v53 = vrot.slane %v404_v49, 1  ;;  %v410_v58 = vrot.slane %v409_v54, 2 }
 0x111   :  { %v394_v56 = vadd.f32 %v393_v52, %v392_v48  ;;  %v399_v59 = vrot.slane %v398_v55, 1  ;;  %v1558_v48 = vld [vmem:[#allocation3 + $0x158] ss:$12 sps:$4 sm:$0xff]   ;;  %v1564_v52 = vld [vmem:[#allocation3 + $0x128] ss:$12 sps:$4 sm:$0xff]  }
 0x112   :  { %v406_v57 = vadd.f32 %v405_v53, %v404_v49  ;;  %v411_v62 = vadd.f32 %v410_v58, %v409_v54  ;;  %v1561_v49 = vld [vmem:[#allocation3 + $0x140] ss:$12 sps:$4 sm:$0xff]   ;;  %v1565_v53 = vld [vmem:[#allocation3 + $0x68] ss:$12 sps:$4 sm:$0xff]   ;;  %v1566_v54 = vld [vmem:[#allocation3 + $0x1d0] ss:$12 sps:$4 sm:$0xff]  }
 0x113   :  { %v414_v60 = vmul.f32 0.125, %v394_v56  ;;  %v400_v63 = vadd.f32 %v399_v59, %v398_v55  ;;  %v1567_v55 = vld [vmem:[#allocation3 + $0x110] ss:$12 sps:$4 sm:$0xff]   ;;  %v1570_v58 = vld [vmem:[#allocation3 + $0xf8] ss:$12 sps:$4 sm:$0xff]  }
 0x114   :  { %v416_v61 = vmul.f32 0.125, %v406_v57  ;;  %v412_v3 = vrot.slane %v411_v62, 1  ;;  %v1568_v56 = vld [vmem:[#allocation3 + $0x50] ss:$12 sps:$4 sm:$0xff]   ;;  %v1569_v57 = vld [vmem:[#allocation3 + $0x1b8] ss:$12 sps:$4 sm:$0xff]  }
 0x115   :  { %v418_v1 = vadd.f32 1e-05, %v414_v60  ;;  %v415_v4 = vmul.f32 0.125, %v400_v63  ;;  %v1571_v59 = vld [vmem:[#allocation3 + $0x38] ss:$12 sps:$4 sm:$0xff]  }
 0x116   :  { %v420_v2 = vadd.f32 1e-05, %v416_v61  ;;  %v413_v5 = vadd.f32 %v412_v3, %v411_v62  ;;  %v1572_v60 = vld [vmem:[#allocation3 + $0x1a0] ss:$12 sps:$4 sm:$0xff]   ;;  %v1575_v63 = vld [vmem:[#allocation3 + $0x188] ss:$12 sps:$4 sm:$0xff]  }
 0x117   :  { %1579 = vrsqrt.f32 %v418_v1  ;;  %v419_v6 = vadd.f32 1e-05, %v415_v4  ;;  %v1573_v61 = vld [vmem:[#allocation3 + $0xe0] ss:$12 sps:$4 sm:$0xff]   ;;  %v1576_v1 = vld [vmem:[#allocation3 + $0xc8] ss:$12 sps:$4 sm:$0xff]  }
 0x118   :  { %1581 = vrsqrt.f32 %v420_v2  ;;  %v417_v7 = vmul.f32 0.125, %v413_v5  ;;  %v1574_v62 = vld [vmem:[#allocation3 + $0x20] ss:$12 sps:$4 sm:$0xff]   ;;  %v1577_v2 = vld [vmem:[#allocation3 + $0x8] ss:$12 sps:$4 sm:$0xff]  }
 0x119   :  { %1583 = vrsqrt.f32 %v419_v6  ;;  %v1578_v3 = vld [vmem:[#allocation3 + $0x248] ss:$12 sps:$4 sm:$0xff]  }
 0x11a   :  { %v421_v8 = vadd.f32 1e-05, %v417_v7 }
 0x11c   :  { %1585 = vrsqrt.f32 %v421_v8 }
 0x124   :  { %v1580_v10 = vpop.eup %1579 }
 0x125   :  { %v1582_v11 = vpop.eup %1581  ;;  %v426_v12 = vmul.f32 %v1580_v10, %v1763_v32 }
 0x126   :  { %v428_v14 = vmul.f32 %v1582_v11, %v1768_v33  ;;  %v1584_v15 = vpop.eup %1583 }
 0x127   :  { %v433_v16 = vrot.slane %v426_v12, %v432_v9  ;;  %v427_v18 = vmul.f32 %v1584_v15, %v1775_v36  ;;  %v576_v12 = vsub.s32 3, %v1757_v30 }
 0x128   :  { %v441_v17 = vrot.slane %v428_v14, %v432_v9  ;;  %v1159_v14 = vsub.s32 5, %v1757_v30 }
 0x129   :  { %v446_v19 = vmul.f32 %v433_v16, %v381_v23  ;;  %v1586_v21 = vpop.eup %1585  ;;  %v437_v22 = vrot.slane %v427_v18, %v432_v9  ;;  %v581_v13 = vrot.slane %v1775_v36, %v576_v12 }
 0x12a   :  { %v429_v26 = vmul.f32 %v1586_v21, %v1780_v37  ;;  %v448_v27 = vmul.f32 %v441_v17, %v1785_v24  ;;  %v1556_v24 = vld [vmem:[#allocation3 + $0xb0] ss:$12 sps:$4 sm:$0xff]   ;;  %v1559_v37 = vld [vmem:[#allocation3 + $0x98] ss:$12 sps:$4 sm:$0xff]   ;;  %v1164_v15 = vrot.slane %v1775_v36, %v1159_v14  ;;  %v1155_v17 = vpop.permute.xlu0 %1154  ;;  %v1160_v18 = vrot.slane %v1763_v32, %v1159_v14 }
 0x12b   :  { %v447_v28 = vmul.f32 %v437_v22, %v382_v29  ;;  %v466_v35 = vadd.f32 %v453_v20, %v446_v19  ;;  %v1181_v20 = vsub.s32 6, %v1757_v30 }
 0x12c   :  { %v445_v38 = vrot.slane %v429_v26, %v432_v9  ;;  %v468_v43 = vadd.f32 %v461_v31, %v448_v27  ;;  %v1170_v21 = vmul.f32 %v1164_v15, %v1155_v17  ;;  %v1169_v26 = vmul.f32 %v1160_v18, %v1155_v17 }
 0x12d   :  { %v467_v40 = vadd.f32 %v457_v25, %v447_v28  ;;  %v1801_v44 = vpack.c.bf16 %v466_v35, %v466_v35  ;;  %v1186_v22 = vrot.slane %v1775_v36, %v1181_v20  ;;  %v1203_v28 = vsub.s32 7, %v1757_v30 }
 0x12e   :  { %v449_v41 = vmul.f32 %v445_v38, %v384_v39  ;;  %v472_v29 = vpack.c.bf16 %v468_v43, %v468_v43  ;;  %v1560_v39 = vld [vmem:[#allocation3 + $0x200] ss:$12 sps:$4 sm:$0xff]   ;;  %v1182_v31 = vrot.slane %v1763_v32, %v1181_v20 }
 0x12f   :  { %v471_v23 = vpack.c.bf16 %v467_v40, %v467_v40  ;;  %v1208_v35 = vrot.slane %v1775_v36, %v1203_v28 }
 0x130   :  { %v469_v45 = vadd.f32 %v465_v34, %v449_v41  ;;  %v1177_v34 = vpop.permute.xlu0 %1176  ;;  %v1199_v41 = vpop.permute.xlu1 %1198 }
 0x131   :  { %1021 = vmatprep.mubr.bf16.mxu0 %v471_v23  ;;  %v1192_v38 = vmul.f32 %v1186_v22, %v1177_v34  ;;  %v1191_v43 = vmul.f32 %v1182_v31, %v1177_v34 }
 0x132   :  { %1022 = vmatmul.mubr.bf16.vlgmr.msra.gmra.mxu0 %v1801_v44  ;;  %v473_v46 = vpack.c.bf16 %v469_v45, %v469_v45 }
 0x133   :  { %1112 = vmatpush1.bf16.msra.mxu0 %v1554_v42  ;;  %v1204_v42 = vrot.slane %v1763_v32, %v1203_v28 }
 0x134   :  { %1390 = vmatprep.mubr.msk.bf16.mxu1 %vm368_vm5, %v473_v46  ;;  %1391 = vmatprep.mubr.msk.bf16.mxu0 %vm368_vm5, %v473_v46  ;;  %v1393_v46 = vld [vmem:[%s1851_s4 + $0x28] ss:$0 sm:$0xff] }
 0x135   :  { %1063 = vmatmul.mubr.bf16.vlgmr.msra.gmra.mxu1 %v472_v29  ;;  %1113 = vmatprep.subr.bf16.mxu0 %v1612_v0 }
 0x136   :  { %1396 = vmatpush3.bf16.msra.mxu1 %v1556_v24  ;;  %1103 = vmatprep.mubr.bf16.mxu1 %v471_v23  ;;  %v1213_v24 = vmul.f32 %v1204_v42, %v1199_v41 }
 0x137   :  { %1114 = vmatpush1.bf16.msra.mxu0 %v1557_v47  ;;  %1397 = vmatprep.subr.bf16.mxu1 %v1558_v48  ;;  %v1221_v48 = vpop.permute.xlu1 %1220 }
 0x138   :  { %1115 = vmatprep.subr.bf16.mxu0 %v1612_v0 }
 0x13a   :  { %1398 = vmatpush3.bf16.msra.mxu1 %v1559_v37  ;;  %v1392_v37 = vld [vmem:[%s1851_s4 + $0x20] ss:$0 sm:$0xff] }
 0x13b   :  { %1116 = vmatpush1.bf16.msra.mxu0 %v1560_v39  ;;  %1399 = vmatprep.subr.bf16.mxu1 %v1561_v49  ;;  %v585_v39 = vrot.slane %v1768_v33, %v576_v12 }
 0x13c   :  { %1117 = vmatprep.subr.bf16.mxu0 %v1612_v0 }
 0x13e   :  { %1400 = vmatpush3.bf16.msra.mxu1 %v1562_v50 }
 0x13f   :  { %1118 = vmatpush1.bf16.msra.mxu0 %v1563_v51  ;;  %1401 = vmatprep.subr.bf16.mxu1 %v1564_v52  ;;  %v1236_v51 = vmul.f32 %v1393_v46, %v1221_v48 }
 0x140   :  { %1119 = vmatprep.subr.bf16.mxu0 %v1612_v0 }
 0x142   :  { %1402 = vmatpush3.bf16.msra.mxu1 %v1565_v53  ;;  %v1168_v53 = vrot.slane %v1768_v33, %v1159_v14 }
 0x143   :  { %1120 = vmatpush1.bf16.msra.mxu0 %v1566_v54  ;;  %1403 = vmatprep.subr.bf16.mxu1 %v1567_v55  ;;  %v1190_v54 = vrot.slane %v1768_v33, %v1181_v20 }
 0x144   :  { %1121 = vmatprep.subr.bf16.mxu0 %v1612_v0 }
 0x146   :  { %1404 = vmatpush3.bf16.msra.mxu1 %v1568_v56 }
 0x147   :  { %1122 = vmatpush1.bf16.msra.mxu0 %v1569_v57  ;;  %1405 = vmatprep.subr.bf16.mxu1 %v1570_v58  ;;  %v1235_v58 = vmul.f32 %v1392_v37, %v1221_v48 }
 0x148   :  { %1123 = vmatprep.subr.bf16.mxu0 %v1612_v0 }
 0x14a   :  { %1406 = vmatpush3.bf16.msra.mxu1 %v1571_v59 }
 0x14b   :  { %1124 = vmatpush1.bf16.msra.mxu0 %v1572_v60  ;;  %1407 = vmatprep.subr.bf16.mxu1 %v1573_v61 }
 0x14c   :  { %1125 = vmatprep.subr.bf16.mxu0 %v1612_v0 }
 0x14e   :  { %1408 = vmatpush3.bf16.msra.mxu1 %v1574_v62  ;;  %v1212_v62 = vrot.slane %v1768_v33, %v1203_v28 }
 0x14f   :  { %1126 = vmatpush1.bf16.msra.mxu0 %v1575_v63  ;;  %1409 = vmatprep.subr.bf16.mxu1 %v1576_v1 }
 0x150   :  { %1141 = vmatprep.subr.bf16.mxu0 %v1612_v0  ;;  %v577_v0 = vrot.slane %v1763_v32, %v576_v12 }
 0x152   :  { %1410 = vmatpush3.bf16.msra.mxu1 %v1577_v2  ;;  %v1171_v2 = vmul.f32 %v1168_v53, %v1155_v17 }
 0x153   :  { %1142 = vmatpush2.bf16.msra.mxu0 %v1578_v3  ;;  %v1193_v3 = vmul.f32 %v1190_v54, %v1177_v34 }
 0x155   :  { %1104 = vmatmul.mubr.bf16.vlgmr.msra.gmra.mxu1 %v1801_v44  ;;  %v1214_v44 = vmul.f32 %v1208_v35, %v1199_v41 }
 0x156   :  { %1144 = vmatmul.mubr.bf16.vlgmr.msra.gmra.mxu0 %v472_v29 }
 0x1f2   :  { %v1023_v4 = vpop.f32.mrf.mxu0 }
 0x1f3   :  { %v1024_v19 = vadd.f32 %v1023_v4, %v577_v0 }
 0x1f4   :  { %v1025_v5 = vpop.f32.mrf.mxu0 }
 0x1f5   :  { %v1064_v6 = vpop.f32.mrf.mxu1  ;;  %v1026_v16 = vadd.f32 %v1025_v5, %v581_v13  ;;  %v1252_v13 = vsub.s32 4, %v1757_v30 }
 0x1f6   :  { %v1027_v7 = vpop.f32.mrf.mxu0  ;;  %v1065_v27 = vadd.f32 %v1064_v6, %v1024_v19  ;;  %v1394_v6 = vld [vmem:[%s1851_s4 + $0x30] ss:$0 sm:$0xff]  ;;  %s1617_s4 = smov 84  }
 0x1f7   :  { %v1066_v8 = vpop.f32.mrf.mxu1  ;;  %v1257_v15 = vrot.slane %v1775_v36, %v1252_v13  ;;  %v1253_v18 = vrot.slane %v1763_v32, %v1252_v13  ;;  %v1261_v20 = vrot.slane %v1768_v33, %v1252_v13 }
 0x1f8   :  { %v1028_v9 = vpop.f32.mrf.mxu0  ;;  %v1067_v25 = vadd.f32 %v1066_v8, %v1026_v16  ;;  %v1172_v23 = vadd.f32 %v1169_v26, %v1065_v27 }
 0x1f9   :  { %v1068_v10 = vpop.f32.mrf.mxu1  ;;  %v1215_v9 = vmul.f32 %v1212_v62, %v1199_v41 }
 0x1fa   :  { %v1173_v40 = vadd.f32 %v1170_v21, %v1067_v25  ;;  %v1194_v29 = vadd.f32 %v1191_v43, %v1172_v23 }
 0x1fb   :  { %v1069_v11 = vpop.f32.mrf.mxu1 }
 0x1fc   :  { %v1195_v45 = vadd.f32 %v1192_v38, %v1173_v40  ;;  %v1216_v57 = vadd.f32 %v1213_v24, %v1194_v29  ;;  %v1237_v11 = vmul.f32 %v1394_v6, %v1221_v48 }
 0x1fe   :  { %v1217_v50 = vadd.f32 %v1214_v44, %v1195_v45  ;;  %v1238_v7 = vadd.f32 %v1235_v58, %v1216_v57 }
 0x200   :  { %v1239_v63 = vadd.f32 %v1236_v51, %v1217_v50  ;;  %v1244_v14 = vmul.f32 0.01, %v1238_v7  ;;  %vm1241_vm7 = vcmp.gt.f32.partialorder %v1238_v7, 0.0 }
 0x202   :  { %v1245_v10 = vmul.f32 0.01, %v1239_v63  ;;  %vm1242_vm6 = vcmp.gt.f32.partialorder %v1239_v63, 0.0  ;;  %v1247_v19 = vsel %vm1241_vm7, %v1238_v7, %v1244_v14 }
 0x203   :  { %v1262_v26 = vmul.f32 %v1253_v18, %v1247_v19 }
 0x204   :  { %v1248_v16 = vsel %vm1242_vm6, %v1239_v63, %v1245_v10 }
 0x205   :  { %v1263_v22 = vmul.f32 %v1257_v15, %v1248_v16 }
 0x207   :  { %v1265_v30 = vadd.f32 %v1263_v22, %v1262_v26 }
 0x215   :  { %v1411_v47 = vpop.f32.mrf.mxu1 }
 0x216   :  { %v1145_v49 = vpop.f32.mrf.mxu0 }
 0x217   :  { %v1412_v52 = vpop.f32.mrf.mxu1 }
 0x218   :  { %v1413_v55 = vadd.f32 %v1412_v52, %v1411_v47  ;;  %v1147_v56 = vpop.f32.mrf.mxu0 }
 0x219   :  { %v1414_v59 = vpop.f32.mrf.mxu1 }
 0x21a   :  { %v1106_v60 = vadd.f32 %v1413_v55, %v585_v39  ;;  %v1148_v61 = vpop.f32.mrf.mxu0 }
 0x21b   :  { %v1415_v1 = vpop.f32.mrf.mxu1 }
 0x21c   :  { %v1146_v4 = vadd.f32 %v1145_v49, %v1106_v60  ;;  %v1149_v5 = vpop.f32.mrf.mxu0 }
 0x21e   :  { %v1174_v8 = vadd.f32 %v1171_v2, %v1146_v4 }
 0x220   :  { %v1196_v12 = vadd.f32 %v1193_v3, %v1174_v8 }
 0x222   :  { %v1218_v0 = vadd.f32 %v1215_v9, %v1196_v12 }
 0x224   :  { %v1240_v17 = vadd.f32 %v1237_v11, %v1218_v0 }
 0x226   :  { %vm1243_vm8 = vcmp.gt.f32.partialorder %v1240_v17, 0.0  ;;  %v1246_v21 = vmul.f32 0.01, %v1240_v17 }
 0x228   :  { %v1249_v25 = vsel %vm1243_vm8, %v1240_v17, %v1246_v21 }
 0x229   :  { %v1264_v27 = vmul.f32 %v1261_v20, %v1249_v25 }
 0x22b   :  { %v1267_v28 = vsel %vm1266_vm9, %v1264_v27, 0.0 }
 0x22c   :  { %v1268_v31 = vadd.f32 %v1267_v28, %v1265_v30 }
 0x22e   :  { %1269 = vadd.xlane.f32.xlu1 %v1268_v31 }
 0x2b7   :  { %v1270_v34 = vpop.xlane.xlu1 %1269 }
 0x2b8   :  { %v1271_v36 = vadd.f32 %v1270_v34, %v1261_v20 }
 0x2ba   :  { %1273 = vrot.lane.b32.xlu0 %v1271_v36, %s1617_s4 }
 0x32c   :  { %v1274_v32 = vpop.permute.xlu0 %1273 }
 0x32d   :  { %1277 = vst.msk [vmem:[%s1852_s5] sm:$0xff] %vm1276_vm10, %v1274_v32 }
 0x32e   :  { %1282 = vsyncpa [#allocation4], 1 }

</bundles_post_ra>
